<compile_context>
chip_gen: v7x
topology: tpu7x:2x2x1
jax: 0.10.0
libtpu: 0.0.40
codegen_flags: <defaults>
</compile_context>

<pallas_src>
import jax
import jax.numpy as jnp
from jax.experimental import pallas as pl
from jax.experimental.pallas import tpu as pltpu


# ----------------------------------------------------------------------------- kernel
def _attention_block_kernel(
    enc_cols_ref,   # (1, 4*HW2, 9*C1)  encoder im2col patches, polyphase-stacked
    dec_cols_ref,   # (1, HW2, 9*C2)    decoder im2col patches
    x2_ref,         # (1, HW2, C2)      raw decoder activations (gating target)
    enc_mask_ref,   # (1, 4*HW2, 9*C1)  1 where patch entry is a real pixel, 0 where conv padding
    dec_mask_ref,   # (1, HW2, 9*C2)
    s1_ref, t1_ref,  # (1, 9*C1) BN1 scale/bias tiled per tap
    s2_ref, t2_ref,  # (1, 9*C2) BN2 scale/bias tiled per tap
    s3_ref, t3_ref,  # (1, D)    BN3 scale/bias
    w1_ref,          # (9*C1, D) encoder conv weight (im2col layout)
    b1_ref,          # (1, D)
    w2_ref,          # (9*C2, D) decoder conv weight
    b2_ref,          # (1, D)
    wa_ref,          # (1, D)    1x1 attention conv weight
    ba_ref,          # (1, 1)
    out_ref,         # (1, HW2, C2)
):
    f32 = jnp.float32
    hw2 = dec_cols_ref.shape[1]

    # ---------------- encoder branch: BN -> ReLU -> conv3x3 -> maxpool2x2 ----------------
    enc = enc_cols_ref[0].astype(f32)                                    # (4*HW2, 9*C1)
    a1 = jnp.maximum(enc * s1_ref[...] + t1_ref[...], 0.0)               # BN + ReLU
    a1 = a1 * enc_mask_ref[0]                                            # zero the conv zero-padding taps
    e = jnp.dot(a1, w1_ref[...], preferred_element_type=f32)             # (4*HW2, D)
    # Row block k = py*2+px holds the conv evaluated at pooled position (2*y2+py, 2*x2+px),
    # so MaxPool2d(2,2) is a max over the four row blocks (static 64-row slices, no reshape).
    p = jnp.maximum(jnp.maximum(e[0 * hw2:1 * hw2], e[1 * hw2:2 * hw2]),
                    jnp.maximum(e[2 * hw2:3 * hw2], e[3 * hw2:4 * hw2]))  # (HW2, D)
    p = p + b1_ref[...]                                                   # conv bias (commutes with max)

    # ---------------- decoder branch: BN -> ReLU -> conv3x3 ----------------
    dec = dec_cols_ref[0].astype(f32)                                    # (HW2, 9*C2)
    a2 = jnp.maximum(dec * s2_ref[...] + t2_ref[...], 0.0)
    a2 = a2 * dec_mask_ref[0]
    d = jnp.dot(a2, w2_ref[...], preferred_element_type=f32) + b2_ref[...]   # (HW2, D)

    # ---------------- attention head: add -> BN -> ReLU -> 1x1 conv -> gate x2 ----------------
    s = p + d
    g = jnp.maximum(s * s3_ref[...] + t3_ref[...], 0.0)                  # (HW2, D)
    attn = jnp.sum(g * wa_ref[...], axis=-1, keepdims=True) + ba_ref[...]  # (HW2, 1)  (1x1 conv on VPU/XLU)
    out_ref[0] = (attn * x2_ref[0].astype(f32)).astype(out_ref.dtype)


# ----------------------------------------------------------------------------- wrapper
def _bn_fold(gamma, beta, mean, var, eps):
    scale = gamma / jnp.sqrt(var + eps)
    return scale, beta - mean * scale


def _im2col_3x3(x_nhwc):
    """x: (B, H, W, C) -> patches (B, H, W, 9*C) and validity mask (1, H, W, 9*C)."""
    b, h, w, c = x_nhwc.shape
    xp = jnp.pad(x_nhwc, ((0, 0), (1, 1), (1, 1), (0, 0)))
    mp = jnp.pad(jnp.ones((1, h, w, 1), jnp.float32), ((0, 0), (1, 1), (1, 1), (0, 0)))
    cols, mask = [], []
    for dy in range(3):
        for dx in range(3):
            cols.append(xp[:, dy:dy + h, dx:dx + w, :])
            mask.append(jnp.broadcast_to(mp[:, dy:dy + h, dx:dx + w, :], (1, h, w, c)))
    return jnp.concatenate(cols, axis=-1), jnp.concatenate(mask, axis=-1)


def attention_block_forward(x1, x2, params):
    """Pallas TPU implementation of AttentionBlock.forward (eval-mode BatchNorm)."""
    B, C1, H1, W1 = x1.shape
    B2, C2, H2, W2 = x2.shape
    assert B == B2 and H1 == 2 * H2 and W1 == 2 * W2, "encoder must be 2x decoder spatial size"
    D = params["conv1_w"].shape[0]
    HW2 = H2 * W2
    K1, K2 = 9 * C1, 9 * C2
    eps = params["eps"]

    # ---- parameter preprocessing (constant folding / layout only) ----
    s1, t1 = _bn_fold(params["bn1_g"], params["bn1_b"], params["bn1_m"], params["bn1_v"], eps)
    s2, t2 = _bn_fold(params["bn2_g"], params["bn2_b"], params["bn2_m"], params["bn2_v"], eps)
    s3, t3 = _bn_fold(params["bn3_g"], params["bn3_b"], params["bn3_m"], params["bn3_v"], eps)
    s1t = jnp.tile(s1, 9).reshape(1, K1).astype(jnp.float32)
    t1t = jnp.tile(t1, 9).reshape(1, K1).astype(jnp.float32)
    s2t = jnp.tile(s2, 9).reshape(1, K2).astype(jnp.float32)
    t2t = jnp.tile(t2, 9).reshape(1, K2).astype(jnp.float32)
    s3r = s3.reshape(1, D).astype(jnp.float32)
    t3r = t3.reshape(1, D).astype(jnp.float32)
    # Conv weights (O, I, 3, 3) -> (9*I, O), matching the im2col column order (tap-major).
    w1f = jnp.transpose(params["conv1_w"], (2, 3, 1, 0)).reshape(K1, D).astype(jnp.float32)
    w2f = jnp.transpose(params["conv2_w"], (2, 3, 1, 0)).reshape(K2, D).astype(jnp.float32)
    b1r = params["conv1_b"].reshape(1, D).astype(jnp.float32)
    b2r = params["conv2_b"].reshape(1, D).astype(jnp.float32)
    war = params["conv3_w"].reshape(1, D).astype(jnp.float32)   # (1, D, 1, 1) -> (1, D)
    bar = params["conv3_b"].reshape(1, 1).astype(jnp.float32)

    # ---- activation layout plumbing (transpose / pad / patch gather only, no math on x) ----
    x1_nhwc = jnp.transpose(x1, (0, 2, 3, 1))
    x2_nhwc = jnp.transpose(x2, (0, 2, 3, 1))
    enc_cols4, enc_mask4 = _im2col_3x3(x1_nhwc)   # (B, H1, W1, K1), (1, H1, W1, K1)
    dec_cols4, dec_mask4 = _im2col_3x3(x2_nhwc)   # (B, H2, W2, K2), (1, H2, W2, K2)

    # Polyphase split of the encoder patches (pool phase k = py*2+px stacked along rows).
    enc_cols = jnp.concatenate(
        [enc_cols4[:, py::2, px::2, :].reshape(B, HW2, K1)
         for py in range(2) for px in range(2)], axis=1)              # (B, 4*HW2, K1)
    enc_mask = jnp.concatenate(
        [enc_mask4[:, py::2, px::2, :].reshape(1, HW2, K1)
         for py in range(2) for px in range(2)], axis=1)              # (1, 4*HW2, K1)
    dec_cols = dec_cols4.reshape(B, HW2, K2)
    dec_mask = dec_mask4.reshape(1, HW2, K2)
    x2_flat = x2_nhwc.reshape(B, HW2, C2)

    in_specs = [
        pl.BlockSpec((1, 4 * HW2, K1), lambda b: (b, 0, 0)),   # enc_cols (per batch)
        pl.BlockSpec((1, HW2, K2), lambda b: (b, 0, 0)),       # dec_cols (per batch)
        pl.BlockSpec((1, HW2, C2), lambda b: (b, 0, 0)),       # x2_flat  (per batch)
        pl.BlockSpec((1, 4 * HW2, K1), lambda b: (0, 0, 0)),   # enc_mask (resident)
        pl.BlockSpec((1, HW2, K2), lambda b: (0, 0, 0)),       # dec_mask (resident)
        pl.BlockSpec((1, K1), lambda b: (0, 0)),               # s1t
        pl.BlockSpec((1, K1), lambda b: (0, 0)),               # t1t
        pl.BlockSpec((1, K2), lambda b: (0, 0)),               # s2t
        pl.BlockSpec((1, K2), lambda b: (0, 0)),               # t2t
        pl.BlockSpec((1, D), lambda b: (0, 0)),                # s3
        pl.BlockSpec((1, D), lambda b: (0, 0)),                # t3
        pl.BlockSpec((K1, D), lambda b: (0, 0)),               # w1f
        pl.BlockSpec((1, D), lambda b: (0, 0)),                # b1
        pl.BlockSpec((K2, D), lambda b: (0, 0)),               # w2f
        pl.BlockSpec((1, D), lambda b: (0, 0)),                # b2
        pl.BlockSpec((1, D), lambda b: (0, 0)),                # wa
        pl.BlockSpec((1, 1), lambda b: (0, 0)),                # ba
    ]
    out_spec = pl.BlockSpec((1, HW2, C2), lambda b: (b, 0, 0))

    bytes_accessed = 4 * (enc_cols.size + dec_cols.size + 2 * x2_flat.size
                          + enc_mask.size + dec_mask.size + w1f.size + w2f.size)
    flops = B * (2 * 4 * HW2 * K1 * D + 2 * HW2 * K2 * D + 2 * HW2 * D + 12 * HW2 * D)
    cost = pl.CostEstimate(flops=flops, transcendentals=0, bytes_accessed=bytes_accessed)

    out = pl.pallas_call(
        _attention_block_kernel,
        out_shape=jax.ShapeDtypeStruct((B, HW2, C2), x2.dtype),
        grid=(B,),
        in_specs=in_specs,
        out_specs=out_spec,
        compiler_params=pltpu.CompilerParams(
            dimension_semantics=("parallel",)),
        cost_estimate=cost,
    )(enc_cols, dec_cols, x2_flat, enc_mask, dec_mask,
      s1t, t1t, s2t, t2t, s3r, t3r, w1f, b1r, w2f, b2r, war, bar)

    return jnp.transpose(out.reshape(B, H2, W2, C2), (0, 3, 1, 2))


# ----------------------------------------------------------------------------- reference
def _reference(x1, x2, params):
    eps = params["eps"]

    def bn(x, g, b, m, v):
        inv = 1.0 / jnp.sqrt(v + eps)
        return (x - m[None, :, None, None]) * (g * inv)[None, :, None, None] + b[None, :, None, None]

    def conv(x, w, b, pad):
        y = jax.lax.conv_general_dilated(
            x, w, window_strides=(1, 1), padding=pad,
            dimension_numbers=("NCHW", "OIHW", "NCHW"),
            precision=jax.lax.Precision.HIGHEST)
        return y + b[None, :, None, None]

    def maxpool2(x):
        b, c, h, w = x.shape
        return jnp.max(x.reshape(b, c, h // 2, 2, w // 2, 2), axis=(3, 5))

    e = conv(jax.nn.relu(bn(x1, params["bn1_g"], params["bn1_b"], params["bn1_m"], params["bn1_v"])),
             params["conv1_w"], params["conv1_b"], ((1, 1), (1, 1)))
    e = maxpool2(e)
    d = conv(jax.nn.relu(bn(x2, params["bn2_g"], params["bn2_b"], params["bn2_m"], params["bn2_v"])),
             params["conv2_w"], params["conv2_b"], ((1, 1), (1, 1)))
    s = e + d
    a = conv(jax.nn.relu(bn(s, params["bn3_g"], params["bn3_b"], params["bn3_m"], params["bn3_v"])),
             params["conv3_w"], params["conv3_b"], ((0, 0), (0, 0)))
    return a * x2


# ----------------------------------------------------------------------------- test
if __name__ == "__main__":
    key = jax.random.PRNGKey(0)
    keys = jax.random.split(key, 16)

    B = 2
    C_enc, C_dec, D = 4, 4, 8        # input_encoder, input_decoder, output_dim
    H1 = W1 = 16                     # encoder spatial = 2x decoder spatial
    H2, W2 = H1 // 2, W1 // 2

    x1 = jax.random.normal(keys[0], (B, C_enc, H1, W1), dtype=jnp.float32)
    x2 = jax.random.normal(keys[1], (B, C_dec, H2, W2), dtype=jnp.float32)

    def bn_params(kg, kb, km, kv, c):
        return (1.0 + 0.1 * jax.random.normal(kg, (c,), jnp.float32),   # gamma
                0.1 * jax.random.normal(kb, (c,), jnp.float32),         # beta
                0.1 * jax.random.normal(km, (c,), jnp.float32),         # running_mean
                1.0 + 0.1 * jax.random.uniform(kv, (c,), jnp.float32))  # running_var

    g1, b1, m1, v1 = bn_params(keys[2], keys[3], keys[4], keys[5], C_enc)
    g2, b2, m2, v2 = bn_params(keys[6], keys[7], keys[8], keys[9], C_dec)
    g3, b3, m3, v3 = bn_params(keys[10], keys[11], keys[12], keys[13], D)

    params = dict(
        eps=1e-5,
        bn1_g=g1, bn1_b=b1, bn1_m=m1, bn1_v=v1,
        bn2_g=g2, bn2_b=b2, bn2_m=m2, bn2_v=v2,
        bn3_g=g3, bn3_b=b3, bn3_m=m3, bn3_v=v3,
        conv1_w=0.1 * jax.random.normal(keys[14], (D, C_enc, 3, 3), jnp.float32),
        conv1_b=0.05 * jnp.arange(D, dtype=jnp.float32) - 0.1,
        conv2_w=0.1 * jax.random.normal(keys[15], (D, C_dec, 3, 3), jnp.float32),
        conv2_b=0.05 - 0.02 * jnp.arange(D, dtype=jnp.float32),
        conv3_w=0.2 * jax.random.normal(jax.random.PRNGKey(42), (1, D, 1, 1), jnp.float32),
        conv3_b=jnp.array([0.03], dtype=jnp.float32),
    )

    out = attention_block_forward(x1, x2, params)
    out = jax.block_until_ready(out)

    ref = _reference(x1, x2, params)
    assert out.shape == x2.shape
    # Tolerance absorbs possible bf16-pass MXU rounding of the in-kernel f32 matmuls.
    assert jnp.allclose(out, ref, atol=2e-3, rtol=2e-3), (
        "mismatch vs reference: max abs err "
        f"{float(jnp.max(jnp.abs(out - ref)))}")

    print("KERNEL_OK")
</pallas_src>

<mosaic_0001>
module attributes {stable_mosaic.version = 11 : i64} {
  func.func @_attention_block_kernel(%arg0: i32, %arg1: memref<1x256x36xf32, #tpu.memory_space<vmem>>, %arg2: memref<1x64x36xf32, #tpu.memory_space<vmem>>, %arg3: memref<1x64x4xf32, #tpu.memory_space<vmem>>, %arg4: memref<1x256x36xf32, #tpu.memory_space<vmem>>, %arg5: memref<1x64x36xf32, #tpu.memory_space<vmem>>, %arg6: memref<1x36xf32, #tpu.memory_space<vmem>>, %arg7: memref<1x36xf32, #tpu.memory_space<vmem>>, %arg8: memref<1x36xf32, #tpu.memory_space<vmem>>, %arg9: memref<1x36xf32, #tpu.memory_space<vmem>>, %arg10: memref<1x8xf32, #tpu.memory_space<vmem>>, %arg11: memref<1x8xf32, #tpu.memory_space<vmem>>, %arg12: memref<36x8xf32, #tpu.memory_space<vmem>>, %arg13: memref<1x8xf32, #tpu.memory_space<vmem>>, %arg14: memref<36x8xf32, #tpu.memory_space<vmem>>, %arg15: memref<1x8xf32, #tpu.memory_space<vmem>>, %arg16: memref<1x8xf32, #tpu.memory_space<vmem>>, %arg17: memref<1x1xf32, #tpu.memory_space<vmem>>, %arg18: memref<1x64x4xf32, #tpu.memory_space<vmem>>) attributes {dimension_semantics = [#tpu.dimension_semantics<parallel>], iteration_bounds = array<i64: 2>, scalar_prefetch = 0 : i64, scratch_operands = 0 : i64, tpu.core_type = #tpu.core_type<tc>, window_params = [{transform_indices = @transform_0, window_bounds = array<i64: 1, 256, 36>}, {transform_indices = @transform_1, window_bounds = array<i64: 1, 64, 36>}, {transform_indices = @transform_2, window_bounds = array<i64: 1, 64, 4>}, {pipeline_mode = #tpu.pipeline_mode<synchronous>, transform_indices = @transform_3, window_bounds = array<i64: 1, 256, 36>}, {pipeline_mode = #tpu.pipeline_mode<synchronous>, transform_indices = @transform_4, window_bounds = array<i64: 1, 64, 36>}, {pipeline_mode = #tpu.pipeline_mode<synchronous>, transform_indices = @transform_5, window_bounds = array<i64: 1, 36>}, {pipeline_mode = #tpu.pipeline_mode<synchronous>, transform_indices = @transform_6, window_bounds = array<i64: 1, 36>}, {pipeline_mode = #tpu.pipeline_mode<synchronous>, transform_indices = @transform_7, window_bounds = array<i64: 1, 36>}, {pipeline_mode = #tpu.pipeline_mode<synchronous>, transform_indices = @transform_8, window_bounds = array<i64: 1, 36>}, {pipeline_mode = #tpu.pipeline_mode<synchronous>, transform_indices = @transform_9, window_bounds = array<i64: 1, 8>}, {pipeline_mode = #tpu.pipeline_mode<synchronous>, transform_indices = @transform_10, window_bounds = array<i64: 1, 8>}, {pipeline_mode = #tpu.pipeline_mode<synchronous>, transform_indices = @transform_11, window_bounds = array<i64: 36, 8>}, {pipeline_mode = #tpu.pipeline_mode<synchronous>, transform_indices = @transform_12, window_bounds = array<i64: 1, 8>}, {pipeline_mode = #tpu.pipeline_mode<synchronous>, transform_indices = @transform_13, window_bounds = array<i64: 36, 8>}, {pipeline_mode = #tpu.pipeline_mode<synchronous>, transform_indices = @transform_14, window_bounds = array<i64: 1, 8>}, {pipeline_mode = #tpu.pipeline_mode<synchronous>, transform_indices = @transform_15, window_bounds = array<i64: 1, 8>}, {pipeline_mode = #tpu.pipeline_mode<synchronous>, transform_indices = @transform_16, window_bounds = array<i64: 1, 1>}, {transform_indices = @transform_17, window_bounds = array<i64: 1, 64, 4>}]} {
    %c0 = arith.constant 0 : index
    %c0_0 = arith.constant 0 : index
    %c0_1 = arith.constant 0 : index
    %0 = vector.load %arg1[%c0, %c0_0, %c0_1] : memref<1x256x36xf32, #tpu.memory_space<vmem>>, vector<1x256x36xf32>
    %1 = vector.shape_cast %0 : vector<1x256x36xf32> to vector<256x36xf32>
    %c0_2 = arith.constant 0 : index
    %c0_3 = arith.constant 0 : index
    %2 = vector.load %arg6[%c0_2, %c0_3] : memref<1x36xf32, #tpu.memory_space<vmem>>, vector<1x36xf32>
    %3 = vector.broadcast %2 : vector<1x36xf32> to vector<256x36xf32>
    %4 = arith.mulf %1, %3 : vector<256x36xf32>
    %c0_4 = arith.constant 0 : index
    %c0_5 = arith.constant 0 : index
    %5 = vector.load %arg7[%c0_4, %c0_5] : memref<1x36xf32, #tpu.memory_space<vmem>>, vector<1x36xf32>
    %6 = vector.broadcast %5 : vector<1x36xf32> to vector<256x36xf32>
    %7 = arith.addf %4, %6 : vector<256x36xf32>
    %cst = arith.constant 0.000000e+00 : f32
    %8 = vector.broadcast %cst : f32 to vector<256x36xf32>
    %9 = arith.maximumf %7, %8 : vector<256x36xf32>
    %c0_6 = arith.constant 0 : index
    %c0_7 = arith.constant 0 : index
    %c0_8 = arith.constant 0 : index
    %10 = vector.load %arg4[%c0_6, %c0_7, %c0_8] : memref<1x256x36xf32, #tpu.memory_space<vmem>>, vector<1x256x36xf32>
    %11 = vector.shape_cast %10 : vector<1x256x36xf32> to vector<256x36xf32>
    %12 = arith.mulf %9, %11 : vector<256x36xf32>
    %c0_9 = arith.constant 0 : index
    %c0_10 = arith.constant 0 : index
    %13 = vector.load %arg12[%c0_9, %c0_10] : memref<36x8xf32, #tpu.memory_space<vmem>>, vector<36x8xf32>
    %cst_11 = arith.constant dense<0.000000e+00> : vector<256x8xf32>
    %14 = tpu.matmul %12, %13, %cst_11 {dimension_numbers = #tpu.dot_dimension_numbers<[1], [0], [0], [1], [0, 0, 1, 1], [], []>} : vector<256x36xf32>, vector<36x8xf32>, vector<256x8xf32> -> vector<256x8xf32>
    %15 = vector.extract_strided_slice %14 {offsets = [0, 0], sizes = [64, 8], strides = [1, 1]} : vector<256x8xf32> to vector<64x8xf32>
    %16 = vector.extract_strided_slice %14 {offsets = [64, 0], sizes = [64, 8], strides = [1, 1]} : vector<256x8xf32> to vector<64x8xf32>
    %17 = arith.maximumf %15, %16 : vector<64x8xf32>
    %18 = vector.extract_strided_slice %14 {offsets = [128, 0], sizes = [64, 8], strides = [1, 1]} : vector<256x8xf32> to vector<64x8xf32>
    %19 = vector.extract_strided_slice %14 {offsets = [192, 0], sizes = [64, 8], strides = [1, 1]} : vector<256x8xf32> to vector<64x8xf32>
    %20 = arith.maximumf %18, %19 : vector<64x8xf32>
    %21 = arith.maximumf %17, %20 : vector<64x8xf32>
    %c0_12 = arith.constant 0 : index
    %c0_13 = arith.constant 0 : index
    %22 = vector.load %arg13[%c0_12, %c0_13] : memref<1x8xf32, #tpu.memory_space<vmem>>, vector<1x8xf32>
    %23 = vector.broadcast %22 : vector<1x8xf32> to vector<64x8xf32>
    %24 = arith.addf %21, %23 : vector<64x8xf32>
    %c0_14 = arith.constant 0 : index
    %c0_15 = arith.constant 0 : index
    %c0_16 = arith.constant 0 : index
    %25 = vector.load %arg2[%c0_14, %c0_15, %c0_16] : memref<1x64x36xf32, #tpu.memory_space<vmem>>, vector<1x64x36xf32>
    %26 = vector.shape_cast %25 : vector<1x64x36xf32> to vector<64x36xf32>
    %c0_17 = arith.constant 0 : index
    %c0_18 = arith.constant 0 : index
    %27 = vector.load %arg8[%c0_17, %c0_18] : memref<1x36xf32, #tpu.memory_space<vmem>>, vector<1x36xf32>
    %28 = vector.broadcast %27 : vector<1x36xf32> to vector<64x36xf32>
    %29 = arith.mulf %26, %28 : vector<64x36xf32>
    %c0_19 = arith.constant 0 : index
    %c0_20 = arith.constant 0 : index
    %30 = vector.load %arg9[%c0_19, %c0_20] : memref<1x36xf32, #tpu.memory_space<vmem>>, vector<1x36xf32>
    %31 = vector.broadcast %30 : vector<1x36xf32> to vector<64x36xf32>
    %32 = arith.addf %29, %31 : vector<64x36xf32>
    %cst_21 = arith.constant 0.000000e+00 : f32
    %33 = vector.broadcast %cst_21 : f32 to vector<64x36xf32>
    %34 = arith.maximumf %32, %33 : vector<64x36xf32>
    %c0_22 = arith.constant 0 : index
    %c0_23 = arith.constant 0 : index
    %c0_24 = arith.constant 0 : index
    %35 = vector.load %arg5[%c0_22, %c0_23, %c0_24] : memref<1x64x36xf32, #tpu.memory_space<vmem>>, vector<1x64x36xf32>
    %36 = vector.shape_cast %35 : vector<1x64x36xf32> to vector<64x36xf32>
    %37 = arith.mulf %34, %36 : vector<64x36xf32>
    %c0_25 = arith.constant 0 : index
    %c0_26 = arith.constant 0 : index
    %38 = vector.load %arg14[%c0_25, %c0_26] : memref<36x8xf32, #tpu.memory_space<vmem>>, vector<36x8xf32>
    %cst_27 = arith.constant dense<0.000000e+00> : vector<64x8xf32>
    %39 = tpu.matmul %37, %38, %cst_27 {dimension_numbers = #tpu.dot_dimension_numbers<[1], [0], [0], [1], [0, 0, 1, 1], [], []>} : vector<64x36xf32>, vector<36x8xf32>, vector<64x8xf32> -> vector<64x8xf32>
    %c0_28 = arith.constant 0 : index
    %c0_29 = arith.constant 0 : index
    %40 = vector.load %arg15[%c0_28, %c0_29] : memref<1x8xf32, #tpu.memory_space<vmem>>, vector<1x8xf32>
    %41 = vector.broadcast %40 : vector<1x8xf32> to vector<64x8xf32>
    %42 = arith.addf %39, %41 : vector<64x8xf32>
    %43 = arith.addf %24, %42 : vector<64x8xf32>
    %c0_30 = arith.constant 0 : index
    %c0_31 = arith.constant 0 : index
    %44 = vector.load %arg10[%c0_30, %c0_31] : memref<1x8xf32, #tpu.memory_space<vmem>>, vector<1x8xf32>
    %45 = vector.broadcast %44 : vector<1x8xf32> to vector<64x8xf32>
    %46 = arith.mulf %43, %45 : vector<64x8xf32>
    %c0_32 = arith.constant 0 : index
    %c0_33 = arith.constant 0 : index
    %47 = vector.load %arg11[%c0_32, %c0_33] : memref<1x8xf32, #tpu.memory_space<vmem>>, vector<1x8xf32>
    %48 = vector.broadcast %47 : vector<1x8xf32> to vector<64x8xf32>
    %49 = arith.addf %46, %48 : vector<64x8xf32>
    %cst_34 = arith.constant 0.000000e+00 : f32
    %50 = vector.broadcast %cst_34 : f32 to vector<64x8xf32>
    %51 = arith.maximumf %49, %50 : vector<64x8xf32>
    %c0_35 = arith.constant 0 : index
    %c0_36 = arith.constant 0 : index
    %52 = vector.load %arg16[%c0_35, %c0_36] : memref<1x8xf32, #tpu.memory_space<vmem>>, vector<1x8xf32>
    %53 = vector.broadcast %52 : vector<1x8xf32> to vector<64x8xf32>
    %54 = arith.mulf %51, %53 : vector<64x8xf32>
    %cst_37 = arith.constant dense<0.000000e+00> : vector<64xf32>
    %55 = vector.multi_reduction <add>, %54, %cst_37 [1] : vector<64x8xf32> to vector<64xf32>
    %56 = vector.shape_cast %55 : vector<64xf32> to vector<64x1xf32>
    %c0_38 = arith.constant 0 : index
    %c0_39 = arith.constant 0 : index
    %57 = vector.load %arg17[%c0_38, %c0_39] : memref<1x1xf32, #tpu.memory_space<vmem>>, vector<1x1xf32>
    %58 = vector.broadcast %57 : vector<1x1xf32> to vector<64x1xf32>
    %59 = arith.addf %56, %58 : vector<64x1xf32>
    %c0_40 = arith.constant 0 : index
    %c0_41 = arith.constant 0 : index
    %c0_42 = arith.constant 0 : index
    %60 = vector.load %arg3[%c0_40, %c0_41, %c0_42] : memref<1x64x4xf32, #tpu.memory_space<vmem>>, vector<1x64x4xf32>
    %61 = vector.shape_cast %60 : vector<1x64x4xf32> to vector<64x4xf32>
    %62 = vector.broadcast %59 : vector<64x1xf32> to vector<64x4xf32>
    %63 = arith.mulf %62, %61 : vector<64x4xf32>
    %c0_43 = arith.constant 0 : index
    %c0_44 = arith.constant 0 : index
    %c0_45 = arith.constant 0 : index
    %64 = vector.load %arg18[%c0_43, %c0_44, %c0_45] : memref<1x64x4xf32, #tpu.memory_space<vmem>>, vector<1x64x4xf32>
    %65 = vector.shape_cast %64 : vector<1x64x4xf32> to vector<64x4xf32>
    %66 = vector.shape_cast %63 : vector<64x4xf32> to vector<1x64x4xf32>
    tpu.vector_store %arg18[%c0_43, %c0_44, %c0_45], %66 {strides = array<i32>} : memref<1x64x4xf32, #tpu.memory_space<vmem>>, vector<1x64x4xf32>,
    return
  }
  func.func @transform_0(%arg0: i32) -> (i32, i32, i32) {
    %c0_i32 = arith.constant 0 : i32
    %c0_i32_0 = arith.constant 0 : i32
    %c0_i32_1 = arith.constant 0 : i32
    return %arg0, %c0_i32, %c0_i32_0 : i32, i32, i32
  }
  func.func @transform_1(%arg0: i32) -> (i32, i32, i32) {
    %c0_i32 = arith.constant 0 : i32
    %c0_i32_0 = arith.constant 0 : i32
    %c0_i32_1 = arith.constant 0 : i32
    return %arg0, %c0_i32, %c0_i32_0 : i32, i32, i32
  }
  func.func @transform_2(%arg0: i32) -> (i32, i32, i32) {
    %c0_i32 = arith.constant 0 : i32
    %c0_i32_0 = arith.constant 0 : i32
    %c0_i32_1 = arith.constant 0 : i32
    return %arg0, %c0_i32, %c0_i32_0 : i32, i32, i32
  }
  func.func @transform_3(%arg0: i32) -> (i32, i32, i32) {
    %c0_i32 = arith.constant 0 : i32
    %c0_i32_0 = arith.constant 0 : i32
    %c0_i32_1 = arith.constant 0 : i32
    %c0_i32_2 = arith.constant 0 : i32
    return %c0_i32, %c0_i32_0, %c0_i32_1 : i32, i32, i32
  }
  func.func @transform_4(%arg0: i32) -> (i32, i32, i32) {
    %c0_i32 = arith.constant 0 : i32
    %c0_i32_0 = arith.constant 0 : i32
    %c0_i32_1 = arith.constant 0 : i32
    %c0_i32_2 = arith.constant 0 : i32
    return %c0_i32, %c0_i32_0, %c0_i32_1 : i32, i32, i32
  }
  func.func @transform_5(%arg0: i32) -> (i32, i32) {
    %c0_i32 = arith.constant 0 : i32
    %c0_i32_0 = arith.constant 0 : i32
    %c0_i32_1 = arith.constant 0 : i32
    return %c0_i32, %c0_i32_0 : i32, i32
  }
  func.func @transform_6(%arg0: i32) -> (i32, i32) {
    %c0_i32 = arith.constant 0 : i32
    %c0_i32_0 = arith.constant 0 : i32
    %c0_i32_1 = arith.constant 0 : i32
    return %c0_i32, %c0_i32_0 : i32, i32
  }
  func.func @transform_7(%arg0: i32) -> (i32, i32) {
    %c0_i32 = arith.constant 0 : i32
    %c0_i32_0 = arith.constant 0 : i32
    %c0_i32_1 = arith.constant 0 : i32
    return %c0_i32, %c0_i32_0 : i32, i32
  }
  func.func @transform_8(%arg0: i32) -> (i32, i32) {
    %c0_i32 = arith.constant 0 : i32
    %c0_i32_0 = arith.constant 0 : i32
    %c0_i32_1 = arith.constant 0 : i32
    return %c0_i32, %c0_i32_0 : i32, i32
  }
  func.func @transform_9(%arg0: i32) -> (i32, i32) {
    %c0_i32 = arith.constant 0 : i32
    %c0_i32_0 = arith.constant 0 : i32
    %c0_i32_1 = arith.constant 0 : i32
    return %c0_i32, %c0_i32_0 : i32, i32
  }
  func.func @transform_10(%arg0: i32) -> (i32, i32) {
    %c0_i32 = arith.constant 0 : i32
    %c0_i32_0 = arith.constant 0 : i32
    %c0_i32_1 = arith.constant 0 : i32
    return %c0_i32, %c0_i32_0 : i32, i32
  }
  func.func @transform_11(%arg0: i32) -> (i32, i32) {
    %c0_i32 = arith.constant 0 : i32
    %c0_i32_0 = arith.constant 0 : i32
    %c0_i32_1 = arith.constant 0 : i32
    return %c0_i32, %c0_i32_0 : i32, i32
  }
  func.func @transform_12(%arg0: i32) -> (i32, i32) {
    %c0_i32 = arith.constant 0 : i32
    %c0_i32_0 = arith.constant 0 : i32
    %c0_i32_1 = arith.constant 0 : i32
    return %c0_i32, %c0_i32_0 : i32, i32
  }
  func.func @transform_13(%arg0: i32) -> (i32, i32) {
    %c0_i32 = arith.constant 0 : i32
    %c0_i32_0 = arith.constant 0 : i32
    %c0_i32_1 = arith.constant 0 : i32
    return %c0_i32, %c0_i32_0 : i32, i32
  }
  func.func @transform_14(%arg0: i32) -> (i32, i32) {
    %c0_i32 = arith.constant 0 : i32
    %c0_i32_0 = arith.constant 0 : i32
    %c0_i32_1 = arith.constant 0 : i32
    return %c0_i32, %c0_i32_0 : i32, i32
  }
  func.func @transform_15(%arg0: i32) -> (i32, i32) {
    %c0_i32 = arith.constant 0 : i32
    %c0_i32_0 = arith.constant 0 : i32
    %c0_i32_1 = arith.constant 0 : i32
    return %c0_i32, %c0_i32_0 : i32, i32
  }
  func.func @transform_16(%arg0: i32) -> (i32, i32) {
    %c0_i32 = arith.constant 0 : i32
    %c0_i32_0 = arith.constant 0 : i32
    %c0_i32_1 = arith.constant 0 : i32
    return %c0_i32, %c0_i32_0 : i32, i32
  }
  func.func @transform_17(%arg0: i32) -> (i32, i32, i32) {
    %c0_i32 = arith.constant 0 : i32
    %c0_i32_0 = arith.constant 0 : i32
    %c0_i32_1 = arith.constant 0 : i32
    return %arg0, %c0_i32, %c0_i32_0 : i32, i32, i32
  }
}

</mosaic_0001>

<bundles_post_ra>
// kernel: tpu_custom_call.1
= control target key start
LH: loop header
LB: loop body
LE: loop exit
PB: predicated region body
PF: predicated region fallthrough
CT: control target
= control target key end

     0   :  { %s1954_s26 = smov 0   ;;  %s2389_s0 = inlined_call_operand.vmem [shape: f32[2,256,36], index: 0, kind: input, shape index: {}]   ;;  %s2390_s1 = inlined_call_operand.vmem [shape: f32[2,64,36], index: 1, kind: input, shape index: {}]   ;;  %s2391_s2 = inlined_call_operand.vmem [shape: f32[2,64,4], index: 2, kind: input, shape index: {}]   ;;  %s2392_s3 = inlined_call_operand.vmem [shape: f32[1,256,36], index: 3, kind: input, shape index: {}]   ;;  %s2393_s4 = inlined_call_operand.vmem [shape: f32[1,64,36], index: 4, kind: input, shape index: {}]   ;;  %s2394_s5 = inlined_call_operand.vmem [shape: f32[1,36], index: 5, kind: input, shape index: {}]   ;;  %s2395_s6 = inlined_call_operand.vmem [shape: f32[1,36], index: 6, kind: input, shape index: {}]   ;;  %s2396_s7 = inlined_call_operand.vmem [shape: f32[1,36], index: 7, kind: input, shape index: {}]   ;;  %s2397_s8 = inlined_call_operand.vmem [shape: f32[1,36], index: 8, kind: input, shape index: {}]   ;;  %s2398_s9 = inlined_call_operand.vmem [shape: f32[1,8], index: 9, kind: input, shape index: {}]   ;;  %s2399_s10 = inlined_call_operand.vmem [shape: f32[1,8], index: 10, kind: input, shape index: {}]   ;;  %s2400_s11 = inlined_call_operand.vmem [shape: f32[36,8], index: 11, kind: input, shape index: {}]   ;;  %s2401_s12 = inlined_call_operand.vmem [shape: f32[1,8], index: 12, kind: input, shape index: {}]   ;;  %s2402_s13 = inlined_call_operand.vmem [shape: f32[36,8], index: 13, kind: input, shape index: {}]   ;;  %s2403_s14 = inlined_call_operand.vmem [shape: f32[1,8], index: 14, kind: input, shape index: {}]   ;;  %s2404_s15 = inlined_call_operand.vmem [shape: f32[1,8], index: 15, kind: input, shape index: {}]   ;;  %s2405_s16 = inlined_call_operand.<no memory space> [shape: f32[1,1], index: 16, kind: input, shape index: {}]   ;;  %s2406_s17 = inlined_call_operand.vmem [shape: f32[2,64,4], index: 17, kind: output, shape index: {}]  }
   0x1   :  { %2407 = sst [smem:[#allocation3_spill]] %s2389_s0  ;;  %v22_v0 = vstv %s2405_s16 }
   0x2   :  { %2408 = sst [smem:[#allocation4_spill]] %s2390_s1  ;;  %23 = vst [vmem:[#allocation2] sm:$0x1] %v22_v0 }
   0x3 LB: > { %s1618_s27 = sadd.s32 4294967295, %s1858_s26   ;;  %p1622_p0 = scmp.ge.s32.totalorder %s1858_s26, 1  ;;  %s1858_s26 = sphi %s1954_s26, %s29_s26  }
   0x4   : > { %p509_p1 = scmp.lt.s32.totalorder %s1858_s26, 3 }
   0x6   : > { %p510_p2 = pnand %p1622_p0, %p509_p1 }
   0x7   : > { %v797_v1 = vld [vmem:[%s2400_s11] sm:$0xff] (!%p510_p2)  ;;  %v798_v2 = vld [vmem:[%s2400_s11 + $0x8] sm:$0xff] (!%p510_p2)  ;;  %v799_v3 = vld [vmem:[%s2400_s11 + $0x10] sm:$0xff] (!%p510_p2)  ;;  %p571_p3 = scmp.lt.s32.totalorder (!%p510_p2), %s1618_s27, 1  ;;  %s2409_s18 = sld [smem:[#allocation3_spill]] (!%p510_p2)  ;;  %vm899_vm0 = vcmask (!%p510_p2), 1043456  }
   0x8   : > { %513 = sbr.rel (%p510_p2) target bundleno = 590 (0x24e), region = 88  ;;  %v1819_v4 = vpack.c.bf16 (!%p510_p2), %v798_v2, %v797_v1  ;;  %v800_v5 = vld [vmem:[%s2400_s11 + $0x18] sm:$0xff] (!%p510_p2)  ;;  %v1980_v7 = vld [vmem:[%s2394_s5] ss:$0 sm:$0xff] (!%p510_p2)  ;;  %v1230_v9 = vld [vmem:[%s2402_s13 + $0x8] sm:$0xff] (!%p510_p2)  ;;  %vm802_vm1 = vcmask (!%p510_p2), 293888  }
   0x9   : > { %v1823_v6 = vpack.c.bf16 (!%p510_p2), %v800_v5, %v799_v3  ;;  %v1229_v8 = vld [vmem:[%s2402_s13] sm:$0xff] (!%p510_p2)  ;;  %v734_v32 = vld [vmem:[%s2392_s3 + $0x8] sm:$0xff] (!%p510_p2)  ;;  %v735_v41 = vld [vmem:[%s2392_s3 + $0x10] sm:$0xff] (!%p510_p2)  ;;  %s2410_s22 = sld [smem:[#allocation4_spill]] (!%p510_p2)  ;;  %vm1434_vm2 = vcmask (!%p510_p2), 64512   ;;  %vm1530_vm3 = vcmask (!%p510_p2), 31744  }
   0xa   : > { %1835 = vmatprep.subr.bf16.mxu1 (!%p510_p2), %v1819_v4  ;;  %1820 = vmatprep.subr.bf16.mxu0 (!%p510_p2), %v1819_v4  ;;  %v801_v10 = vld [vmem:[%s2400_s11 + $0x20] sm:$0xf] (!%p510_p2)  ;;  %v2006_v17 = vpack.c.bf16 (!%p510_p2), %v1230_v9, %v1229_v8  ;;  %v754_v34 = vld [vmem:[%s2392_s3 + $0xa8] sm:$0xff] (!%p510_p2)  ;;  %v755_v42 = vld [vmem:[%s2392_s3 + $0xb0] sm:$0xff] (!%p510_p2) }
   0xb   : > { %1838 = vmatpush3.bf16.msra.mxu1 (!%p510_p2), %v1819_v4  ;;  %1822 = vmatpush3.bf16.msra.mxu0 (!%p510_p2), %v1819_v4  ;;  %v1999_v11 = vld [vmem:[%s2395_s6] ss:$0 sm:$0xff] (!%p510_p2)  ;;  %v1231_v50 = vld [vmem:[%s2402_s13 + $0x10] sm:$0xff] (!%p510_p2)  ;;  %v1232_v51 = vld [vmem:[%s2402_s13 + $0x18] sm:$0xff] (!%p510_p2) }
   0xc   : > { %1836 = vmatprep.subr.bf16.mxu1 (!%p510_p2), %v1823_v6  ;;  %1824 = vmatprep.subr.bf16.mxu0 (!%p510_p2), %v1823_v6  ;;  %v733_v28 = vld [vmem:[%s2392_s3] sm:$0xff] (!%p510_p2)  ;;  %v736_v55 = vld [vmem:[%s2392_s3 + $0x18] sm:$0xff] (!%p510_p2)  ;;  %v1831_v3 = vpack.c.bf16 (!%p510_p2), %v1232_v51, %v1231_v50 }
   0xd   : > { %v753_v31 = vld [vmem:[%s2392_s3 + $0xa0] sm:$0xff] (!%p510_p2)  ;;  %v756_v63 = vld [vmem:[%s2392_s3 + $0xb8] sm:$0xff] (!%p510_p2) }
   0xf   : > { %s2412_s27 = smov (!%p571_p3, %s1618_s27), 1  ;;  %1839 = vmatpush3.bf16.msra.mxu1 %v1823_v6  ;;  %1826 = vmatpush3.bf16.msra.mxu0 %v1823_v6 }
  0x10   : > { %s1685_s20 = sshll.u32 %s2412_s27, 8  ;;  %1837 = vmatprep.subr.msk.mxu1 %vm899_vm0, %v801_v10  ;;  %1747 = vmatprep.subr.msk.mxu0 %vm899_vm0, %v801_v10 }
  0x11   : > { %s1994_s19 = scalar_lea.vmem %s2409_s18, %s1685_s20  ;;  %s2125_s18 = sshll.u32 %s2412_s27, 6 }
  0x12   : > { %v591_v12 = vld [vmem:[%s1994_s19] sm:$0xff]  ;;  %v592_v14 = vld [vmem:[%s1994_s19 + $0x8] sm:$0xff]  ;;  %v593_v20 = vld [vmem:[%s1994_s19 + $0x10] sm:$0xff]  ;;  %s2149_s23 = scalar_lea.vmem %s2410_s22, %s2125_s18  ;;  %s585_s24 = scalar_lea.vmem %s2391_s2, %s2125_s18 }
  0x13   : > { %v611_v13 = vld [vmem:[%s1994_s19 + $0xa0] sm:$0xff]  ;;  %v630_v15 = vmul.f32 %v1980_v7, %v591_v12  ;;  %v631_v18 = vmul.f32 %v1980_v7, %v592_v14  ;;  %v612_v19 = vld [vmem:[%s1994_s19 + $0xa8] sm:$0xff]  ;;  %v613_v21 = vld [vmem:[%s1994_s19 + $0xb0] sm:$0xff]  ;;  %v632_v23 = vmul.f32 %v1980_v7, %v593_v20  ;;  %1840 = vmatpush3.msk.msra.mxu1 %vm899_vm0, %v801_v10  ;;  %1748 = vmatpush3.msk.msra.mxu0 %vm899_vm0, %v801_v10  ;;  %s2368_s29 = scalar_lea.vmem %s2406_s17, %s2125_s18 }
  0x14   : > { %v650_v16 = vmul.f32 %v1980_v7, %v611_v13  ;;  %v651_v22 = vmul.f32 %v1980_v7, %v612_v19  ;;  %v652_v24 = vmul.f32 %v1980_v7, %v613_v21  ;;  %v594_v25 = vld [vmem:[%s1994_s19 + $0x18] sm:$0xff]  ;;  %v595_v44 = vld [vmem:[%s1994_s19 + $0x20] sm:$0xff]  ;;  %1828 = vmatprep.subr.bf16.mxu1 %v2006_v17  ;;  %v596_v57 = vld [vmem:[%s1994_s19 + $0x28] sm:$0xff] }
  0x15   : > { %v614_v26 = vld [vmem:[%s1994_s19 + $0xb8] sm:$0xff]  ;;  %v669_v27 = vadd.f32 %v1999_v11, %v630_v15  ;;  %v670_v30 = vadd.f32 %v1999_v11, %v631_v18  ;;  %v671_v35 = vadd.f32 %v1999_v11, %v632_v23  ;;  %v633_v37 = vmul.f32 %v1980_v7, %v594_v25  ;;  %v615_v49 = vld [vmem:[%s1994_s19 + $0xc0] sm:$0xff]  ;;  %v616_v58 = vld [vmem:[%s1994_s19 + $0xc8] sm:$0xff] }
  0x16   : > { %v689_v29 = vadd.f32 %v1999_v11, %v650_v16  ;;  %v690_v33 = vadd.f32 %v1999_v11, %v651_v22  ;;  %v691_v36 = vadd.f32 %v1999_v11, %v652_v24  ;;  %v653_v43 = vmul.f32 %v1980_v7, %v614_v26  ;;  %v597_v4 = vld [vmem:[%s1994_s19 + $0x30] sm:$0xff]  ;;  %v598_v10 = vld [vmem:[%s1994_s19 + $0x38] sm:$0xff]  ;;  %v737_v16 = vld [vmem:[%s2392_s3 + $0x20] sm:$0xff] }
  0x17   : > { %v701_v38 = vmax.f32 %v669_v27, 0.0  ;;  %v702_v40 = vmax.f32 %v670_v30, 0.0  ;;  %v703_v46 = vmax.f32 %v671_v35, 0.0  ;;  %v672_v48 = vadd.f32 %v1999_v11, %v633_v37  ;;  %v617_v9 = vld [vmem:[%s1994_s19 + $0xd0] sm:$0xff]  ;;  %v618_v15 = vld [vmem:[%s1994_s19 + $0xd8] sm:$0xff]  ;;  %v757_v18 = vld [vmem:[%s2392_s3 + $0xc0] sm:$0xff] }
  0x18   : > { %v721_v39 = vmax.f32 %v689_v29, 0.0  ;;  %v722_v45 = vmax.f32 %v690_v33, 0.0  ;;  %v723_v47 = vmax.f32 %v691_v36, 0.0  ;;  %v692_v56 = vadd.f32 %v1999_v11, %v653_v43  ;;  %v738_v23 = vld [vmem:[%s2392_s3 + $0x28] sm:$0xff]  ;;  %v1233_v27 = vld [vmem:[%s2402_s13 + $0x20] sm:$0xf] }
  0x19   : > { %v765_v52 = vmul.f32 %v733_v28, %v701_v38  ;;  %v766_v54 = vmul.f32 %v734_v32, %v702_v40  ;;  %v767_v60 = vmul.f32 %v735_v41, %v703_v46  ;;  %v704_v62 = vmax.f32 %v672_v48, 0.0  ;;  %v758_v24 = vld [vmem:[%s2392_s3 + $0xc8] sm:$0xff]  ;;  %v599_v32 = vld [vmem:[%s1994_s19 + $0x40] sm:$0xff]  ;;  %v739_v36 = vld [vmem:[%s2392_s3 + $0x30] sm:$0xff] }
  0x1a   : > { %v785_v53 = vmul.f32 %v753_v31, %v721_v39  ;;  %v786_v59 = vmul.f32 %v754_v34, %v722_v45  ;;  %v787_v61 = vmul.f32 %v755_v42, %v723_v47  ;;  %v724_v0 = vmax.f32 %v692_v56, 0.0  ;;  %v619_v33 = vld [vmem:[%s1994_s19 + $0xe0] sm:$0xff]  ;;  %v600_v39 = vld [vmem:[%s1994_s19 + $0x48] sm:$0xff]  ;;  %v740_v45 = vld [vmem:[%s2392_s3 + $0x38] sm:$0xff] }
  0x1b   : > { %1749 = vmatprep.mubr.msk.f32.mxu0 %vm802_vm1, %v765_v52  ;;  %v634_v1 = vmul.f32 %v1980_v7, %v595_v44  ;;  %v654_v2 = vmul.f32 %v1980_v7, %v615_v49  ;;  %v768_v5 = vmul.f32 %v736_v55, %v704_v62  ;;  %v635_v6 = vmul.f32 %v1980_v7, %v596_v57  ;;  %v620_v40 = vld [vmem:[%s1994_s19 + $0xe8] sm:$0xff]  ;;  %v759_v44 = vld [vmem:[%s2392_s3 + $0xd0] sm:$0xff]  ;;  %v760_v49 = vld [vmem:[%s2392_s3 + $0xd8] sm:$0xff] }
  0x1c   : > { %1779 = vmatprep.mubr.msk.f32.mxu1 %vm802_vm1, %v785_v53  ;;  %1750 = vmatmul.mubr.msk.f32.vlgmr.msra.gmra.mrb[0].mxu0 %vm802_vm1, %v766_v54  ;;  %v655_v8 = vmul.f32 %v1980_v7, %v616_v58  ;;  %v788_v12 = vmul.f32 %v756_v63, %v724_v0  ;;  %v636_v20 = vmul.f32 %v1980_v7, %v597_v4  ;;  %v601_v52 = vld [vmem:[%s1994_s19 + $0x50] sm:$0xff]  ;;  %v602_v58 = vld [vmem:[%s1994_s19 + $0x58] sm:$0xff] }
  0x1d   : > { %1780 = vmatmul.mubr.msk.f32.vlgmr.msra.gmra.mrb[0].mxu1 %vm802_vm1, %v786_v59  ;;  %1752 = vmatprep.mubr.msk.f32.mxu0 %vm802_vm1, %v767_v60  ;;  %v673_v13 = vadd.f32 %v1999_v11, %v634_v1  ;;  %v693_v14 = vadd.f32 %v1999_v11, %v654_v2  ;;  %v656_v25 = vmul.f32 %v1980_v7, %v617_v9  ;;  %v621_v57 = vld [vmem:[%s1994_s19 + $0xf0] sm:$0xff]  ;;  %v622_v63 = vld [vmem:[%s1994_s19 + $0xf8] sm:$0xff]  ;;  %v741_v1 = vld [vmem:[%s2392_s3 + $0x40] sm:$0xff] }
  0x1e   : > { %1830 = vmatpush3.bf16.msra.mxu1 %v2006_v17  ;;  %1782 = vmatprep.mubr.msk.f32.mxu1 %vm802_vm1, %v787_v61  ;;  %v674_v17 = vadd.f32 %v1999_v11, %v635_v6  ;;  %v694_v19 = vadd.f32 %v1999_v11, %v655_v8  ;;  %v637_v26 = vmul.f32 %v1980_v7, %v598_v10  ;;  %v761_v2 = vld [vmem:[%s2392_s3 + $0xe0] sm:$0xff]  ;;  %v742_v9 = vld [vmem:[%s2392_s3 + $0x48] sm:$0xff] }
  0x1f   : > { %1832 = vmatprep.subr.bf16.mxu1 %v1831_v3  ;;  %v705_v21 = vmax.f32 %v673_v13, 0.0  ;;  %v725_v22 = vmax.f32 %v693_v14, 0.0  ;;  %v675_v30 = vadd.f32 %v1999_v11, %v636_v20  ;;  %v657_v31 = vmul.f32 %v1980_v7, %v618_v15  ;;  %v762_v10 = vld [vmem:[%s2392_s3 + $0xe8] sm:$0xff]  ;;  %v2179_v20 = vld [vmem:[%s2396_s7] ss:$0 sm:$0xff] }
  0x20   : > { %1753 = vmatmul.mubr.msk.f32.gmra.mrb[2].mxu0 %vm802_vm1, %v768_v5  ;;  %v706_v28 = vmax.f32 %v674_v17, 0.0  ;;  %v726_v29 = vmax.f32 %v694_v19, 0.0  ;;  %v695_v37 = vadd.f32 %v1999_v11, %v656_v25  ;;  %v676_v38 = vadd.f32 %v1999_v11, %v637_v26  ;;  %v603_v17 = vld [vmem:[%s1994_s19 + $0x60] sm:$0xff]  ;;  %v604_v26 = vld [vmem:[%s1994_s19 + $0x68] sm:$0xff] }
  0x21   : > { %1783 = vmatmul.mubr.msk.f32.gmra.mrb[2].mxu1 %vm802_vm1, %v788_v12  ;;  %v769_v34 = vmul.f32 %v737_v16, %v705_v21  ;;  %v789_v35 = vmul.f32 %v757_v18, %v725_v22  ;;  %v707_v43 = vmax.f32 %v675_v30, 0.0  ;;  %v696_v46 = vadd.f32 %v1999_v11, %v657_v31  ;;  %v1167_v19 = vld [vmem:[%s2149_s23] sm:$0xff]  ;;  %v763_v31 = vld [vmem:[%s2392_s3 + $0xf0] sm:$0xff] }
  0x22   : > { %1834 = vmatpush3.bf16.msra.mxu1 %v1831_v3  ;;  %v770_v41 = vmul.f32 %v738_v23, %v706_v28  ;;  %v790_v42 = vmul.f32 %v758_v24, %v726_v29  ;;  %v727_v47 = vmax.f32 %v695_v37, 0.0  ;;  %v708_v48 = vmax.f32 %v676_v38, 0.0  ;;  %v743_v23 = vld [vmem:[%s2392_s3 + $0x50] sm:$0xff]  ;;  %v764_v37 = vld [vmem:[%s2392_s3 + $0xf8] sm:$0xff] }
  0x23   : > { %1805 = vmatprep.subr.msk.mxu1 %vm899_vm0, %v1233_v27  ;;  %1755 = vmatprep.mubr.msk.f32.mxu0 %vm802_vm1, %v769_v34  ;;  %v638_v50 = vmul.f32 %v1980_v7, %v599_v32  ;;  %v658_v51 = vmul.f32 %v1980_v7, %v619_v33  ;;  %v771_v53 = vmul.f32 %v739_v36, %v707_v43  ;;  %v728_v54 = vmax.f32 %v696_v46, 0.0  ;;  %v744_v32 = vld [vmem:[%s2392_s3 + $0x58] sm:$0xff]  ;;  %v2198_v34 = vld [vmem:[%s2397_s8] ss:$0 sm:$0xff] }
  0x24   : > { %1785 = vmatprep.mubr.msk.f32.mxu1 %vm802_vm1, %v789_v35  ;;  %1756 = vmatmul.mubr.msk.f32.gmra.mrb[4].mxu0 %vm802_vm1, %v770_v41  ;;  %v639_v55 = vmul.f32 %v1980_v7, %v600_v39  ;;  %v659_v56 = vmul.f32 %v1980_v7, %v620_v40  ;;  %v791_v59 = vmul.f32 %v759_v44, %v727_v47  ;;  %v605_v40 = vld [vmem:[%s1994_s19 + $0x70] sm:$0xff]  ;;  %v606_v46 = vld [vmem:[%s1994_s19 + $0x78] sm:$0xff] }
  0x25   : > { %1786 = vmatmul.mubr.msk.f32.gmra.mrb[4].mxu1 %vm802_vm1, %v790_v42  ;;  %v772_v60 = vmul.f32 %v740_v45, %v708_v48  ;;  %v677_v61 = vadd.f32 %v1999_v11, %v638_v50  ;;  %v697_v62 = vadd.f32 %v1999_v11, %v658_v51  ;;  %1758 = vmatprep.mubr.msk.f32.mxu0 %vm802_vm1, %v771_v53  ;;  %v1169_v45 = vld [vmem:[%s2149_s23 + $0x10] sm:$0xff]  ;;  %v1170_v51 = vld [vmem:[%s2149_s23 + $0x18] sm:$0xff]  ;;  %v745_v53 = vld [vmem:[%s2392_s3 + $0x60] sm:$0xff] }
  0x26   : > { %1806 = vmatpush3.msk.msra.mxu1 %vm899_vm0, %v1233_v27  ;;  %v792_v0 = vmul.f32 %v760_v49, %v728_v54  ;;  %v678_v3 = vadd.f32 %v1999_v11, %v639_v55  ;;  %v698_v4 = vadd.f32 %v1999_v11, %v659_v56  ;;  %v640_v5 = vmul.f32 %v1980_v7, %v601_v52  ;;  %v1168_v27 = vld [vmem:[%s2149_s23 + $0x8] sm:$0xff]  ;;  %v1213_v54 = vld [vmem:[%s2393_s4] sm:$0xff] }
  0x27   : > { %1788 = vmatprep.mubr.msk.f32.mxu1 %vm802_vm1, %v791_v59  ;;  %v709_v6 = vmax.f32 %v677_v61, 0.0  ;;  %v729_v8 = vmax.f32 %v697_v62, 0.0  ;;  %v660_v12 = vmul.f32 %v1980_v7, %v621_v57  ;;  %v641_v13 = vmul.f32 %v1980_v7, %v602_v58  ;;  %v1214_v61 = vld [vmem:[%s2393_s4 + $0x8] sm:$0xff] }
  0x28   : > { %1759 = vmatmul.mubr.msk.f32.gmra.mrb[6].mxu0 %vm802_vm1, %v772_v60  ;;  %v710_v14 = vmax.f32 %v678_v3, 0.0  ;;  %v730_v15 = vmax.f32 %v698_v4, 0.0  ;;  %v679_v16 = vadd.f32 %v1999_v11, %v640_v5  ;;  %v661_v18 = vmul.f32 %v1980_v7, %v622_v63  ;;  %v746_v60 = vld [vmem:[%s2392_s3 + $0x68] sm:$0xff]  ;;  %v607_v4 = vld [vmem:[%s1994_s19 + $0x80] sm:$0xff] }
  0x29   : > { %1789 = vmatmul.mubr.msk.f32.gmra.mrb[6].mxu1 %vm802_vm1, %v792_v0  ;;  %v773_v21 = vmul.f32 %v741_v1, %v709_v6  ;;  %v793_v22 = vmul.f32 %v761_v2, %v729_v8  ;;  %v699_v24 = vadd.f32 %v1999_v11, %v660_v12  ;;  %v680_v25 = vadd.f32 %v1999_v11, %v641_v13  ;;  %v1171_v5 = vld [vmem:[%s2149_s23 + $0x20] sm:$0xff]  ;;  %v608_v13 = vld [vmem:[%s1994_s19 + $0x88] sm:$0xff] }
  0x2a   : > { %v774_v28 = vmul.f32 %v742_v9, %v710_v14  ;;  %v794_v29 = vmul.f32 %v762_v10, %v730_v15  ;;  %v711_v30 = vmax.f32 %v679_v16, 0.0  ;;  %v700_v33 = vadd.f32 %v1999_v11, %v661_v18  ;;  %v747_v9 = vld [vmem:[%s2392_s3 + $0x70] sm:$0xff]  ;;  %v1172_v14 = vld [vmem:[%s2149_s23 + $0x28] sm:$0xff] }
  0x2b   : > { %1761 = vmatprep.mubr.msk.f32.mxu0 %vm802_vm1, %v773_v21  ;;  %1791 = vmatprep.mubr.msk.f32.mxu1 %vm802_vm1, %v793_v22  ;;  %v731_v35 = vmax.f32 %v699_v24, 0.0  ;;  %v712_v36 = vmax.f32 %v680_v25, 0.0  ;;  %v642_v38 = vmul.f32 %v1980_v7, %v603_v17  ;;  %v1182_v39 = vmul.f32 %v2179_v20, %v1167_v19  ;;  %v1215_v17 = vld [vmem:[%s2393_s4 + $0x10] sm:$0xff]  ;;  %v748_v19 = vld [vmem:[%s2392_s3 + $0x78] sm:$0xff] }
  0x2c   : > { %1762 = vmatmul.mubr.msk.f32.gmra.mrb[8].mxu0 %vm802_vm1, %v774_v28  ;;  %v775_v41 = vmul.f32 %v743_v23, %v711_v30  ;;  %v732_v42 = vmax.f32 %v700_v33, 0.0  ;;  %v643_v43 = vmul.f32 %v1980_v7, %v604_v26  ;;  %v1183_v44 = vmul.f32 %v2179_v20, %v1168_v27  ;;  %v1216_v24 = vld [vmem:[%s2393_s4 + $0x18] sm:$0xff]  ;;  %v609_v27 = vld [vmem:[%s1994_s19 + $0x90] sm:$0xff] }
  0x2d   : > { %1792 = vmatmul.mubr.msk.f32.gmra.mrb[8].mxu1 %vm802_vm1, %v794_v29  ;;  %v795_v47 = vmul.f32 %v763_v31, %v731_v35  ;;  %v776_v48 = vmul.f32 %v744_v32, %v712_v36  ;;  %v681_v49 = vadd.f32 %v1999_v11, %v642_v38  ;;  %v1197_v50 = vadd.f32 %v2198_v34, %v1182_v39  ;;  %v1173_v32 = vld [vmem:[%s2149_s23 + $0x30] sm:$0xff]  ;;  %v610_v33 = vld [vmem:[%s1994_s19 + $0x98] sm:$0xff] }
  0x2e   : > { %1764 = vmatprep.mubr.msk.f32.mxu0 %vm802_vm1, %v775_v41  ;;  %v796_v52 = vmul.f32 %v764_v37, %v732_v42  ;;  %v682_v55 = vadd.f32 %v1999_v11, %v643_v43  ;;  %v1198_v56 = vadd.f32 %v2198_v34, %v1183_v44  ;;  %v644_v57 = vmul.f32 %v1980_v7, %v605_v40  ;;  %v1174_v39 = vld [vmem:[%s2149_s23 + $0x38] sm:$0xff]  ;;  %v749_v41 = vld [vmem:[%s2392_s3 + $0x80] sm:$0xff] }
  0x2f   : > { %1794 = vmatprep.mubr.msk.f32.mxu1 %vm802_vm1, %v795_v47  ;;  %v713_v58 = vmax.f32 %v681_v49, 0.0  ;;  %v1205_v59 = vmax.f32 %v1197_v50, 0.0  ;;  %v1184_v62 = vmul.f32 %v2179_v20, %v1169_v45  ;;  %v645_v63 = vmul.f32 %v1980_v7, %v606_v46  ;;  %v1217_v42 = vld [vmem:[%s2393_s4 + $0x20] sm:$0xff]  ;;  %v1218_v49 = vld [vmem:[%s2393_s4 + $0x28] sm:$0xff] }
  0x30   : > { %1765 = vmatmul.mubr.msk.f32.gmra.mrb[10].mxu0 %vm802_vm1, %v776_v48  ;;  %v714_v0 = vmax.f32 %v682_v55, 0.0  ;;  %v1206_v1 = vmax.f32 %v1198_v56, 0.0  ;;  %v683_v2 = vadd.f32 %v1999_v11, %v644_v57  ;;  %v1185_v3 = vmul.f32 %v2179_v20, %v1170_v51  ;;  %v750_v48 = vld [vmem:[%s2392_s3 + $0x88] sm:$0xff] }
  0x31   : > { %1795 = vmatmul.mubr.msk.f32.gmra.mrb[10].mxu1 %vm802_vm1, %v796_v52  ;;  %v777_v6 = vmul.f32 %v745_v53, %v713_v58  ;;  %v1221_v8 = vmul.f32 %v1213_v54, %v1205_v59  ;;  %v1199_v10 = vadd.f32 %v2198_v34, %v1184_v62  ;;  %v684_v12 = vadd.f32 %v1999_v11, %v645_v63  ;;  %v751_v58 = vld [vmem:[%s2392_s3 + $0x90] sm:$0xff] }
  0x32   : > { %v778_v15 = vmul.f32 %v746_v60, %v714_v0  ;;  %v1222_v16 = vmul.f32 %v1214_v61, %v1206_v1  ;;  %v715_v18 = vmax.f32 %v683_v2, 0.0  ;;  %v1200_v21 = vadd.f32 %v2198_v34, %v1185_v3  ;;  %v1219_v63 = vld [vmem:[%s2393_s4 + $0x30] sm:$0xff] }
  0x33   : > { %1767 = vmatprep.mubr.msk.f32.mxu0 %vm802_vm1, %v777_v6  ;;  %1807 = vmatprep.mubr.msk.f32.mxu1 %vm802_vm1, %v1221_v8  ;;  %v1207_v22 = vmax.f32 %v1199_v10, 0.0  ;;  %v716_v23 = vmax.f32 %v684_v12, 0.0  ;;  %v646_v25 = vmul.f32 %v1980_v7, %v607_v4  ;;  %v1186_v26 = vmul.f32 %v2179_v20, %v1171_v5 }
  0x34   : > { %1768 = vmatmul.mubr.msk.f32.gmra.mrb[12].mxu0 %vm802_vm1, %v778_v15  ;;  %v779_v28 = vmul.f32 %v747_v9, %v715_v18  ;;  %v1208_v29 = vmax.f32 %v1200_v21, 0.0  ;;  %v647_v30 = vmul.f32 %v1980_v7, %v608_v13  ;;  %v1187_v31 = vmul.f32 %v2179_v20, %v1172_v14 }
  0x35   : > { %1808 = vmatmul.mubr.msk.f32.vlgmr.msra.gmra.mrb[12].mxu1 %vm802_vm1, %v1222_v16  ;;  %v1223_v35 = vmul.f32 %v1215_v17, %v1207_v22  ;;  %v780_v36 = vmul.f32 %v748_v19, %v716_v23  ;;  %v685_v37 = vadd.f32 %v1999_v11, %v646_v25  ;;  %v1201_v38 = vadd.f32 %v2198_v34, %v1186_v26 }
  0x36   : > { %1770 = vmatprep.mubr.msk.f32.mxu0 %vm802_vm1, %v779_v28  ;;  %v1224_v40 = vmul.f32 %v1216_v24, %v1208_v29  ;;  %v686_v43 = vadd.f32 %v1999_v11, %v647_v30  ;;  %v1202_v44 = vadd.f32 %v2198_v34, %v1187_v31  ;;  %v648_v45 = vmul.f32 %v1980_v7, %v609_v27 }
  0x37   : > { %1810 = vmatprep.mubr.msk.f32.mxu1 %vm802_vm1, %v1223_v35  ;;  %v717_v46 = vmax.f32 %v685_v37, 0.0  ;;  %v1209_v47 = vmax.f32 %v1201_v38, 0.0  ;;  %v1188_v50 = vmul.f32 %v2179_v20, %v1173_v32  ;;  %v649_v51 = vmul.f32 %v1980_v7, %v610_v33 }
  0x38   : > { %1771 = vmatmul.mubr.msk.f32.gmra.mrb[14].mxu0 %vm802_vm1, %v780_v36  ;;  %v718_v52 = vmax.f32 %v686_v43, 0.0  ;;  %v1210_v53 = vmax.f32 %v1202_v44, 0.0  ;;  %v687_v54 = vadd.f32 %v1999_v11, %v648_v45  ;;  %v1189_v55 = vmul.f32 %v2179_v20, %v1174_v39  ;;  %v752_v20 = vld [vmem:[%s2392_s3 + $0x98] sm:$0xff] }
  0x39   : > { %1811 = vmatmul.mubr.msk.f32.gmra.mrb[14].mxu1 %vm802_vm1, %v1224_v40  ;;  %v781_v56 = vmul.f32 %v749_v41, %v717_v46  ;;  %v1225_v57 = vmul.f32 %v1217_v42, %v1209_v47  ;;  %v1203_v59 = vadd.f32 %v2198_v34, %v1188_v50  ;;  %v688_v7 = vadd.f32 %v1999_v11, %v649_v51  ;;  %v1220_v11 = vld [vmem:[%s2393_s4 + $0x38] sm:$0xff] }
  0x3a   : > { %v782_v60 = vmul.f32 %v750_v48, %v718_v52  ;;  %v1226_v61 = vmul.f32 %v1218_v49, %v1210_v53  ;;  %v719_v62 = vmax.f32 %v687_v54, 0.0  ;;  %v1204_v0 = vadd.f32 %v2198_v34, %v1189_v55 }
  0x3b   : > { %1773 = vmatprep.mubr.msk.f32.mxu0 %vm802_vm1, %v781_v56  ;;  %1813 = vmatprep.mubr.msk.f32.mxu1 %vm802_vm1, %v1225_v57  ;;  %v1211_v1 = vmax.f32 %v1203_v59, 0.0  ;;  %v720_v2 = vmax.f32 %v688_v7, 0.0  ;;  %v1666_v57 = vld [vmem:[%s2401_s12] ss:$0 sm:$0xff] }
  0x3c   : > { %1774 = vmatmul.mubr.msk.f32.gmra.mrb[16].mxu0 %vm802_vm1, %v782_v60  ;;  %v783_v3 = vmul.f32 %v751_v58, %v719_v62  ;;  %v1212_v4 = vmax.f32 %v1204_v0, 0.0  ;;  %v1669_v58 = vld [vmem:[%s2403_s14] ss:$0 sm:$0xff] }
  0x3d   : > { %1814 = vmatmul.mubr.msk.f32.gmra.mrb[16].mxu1 %vm802_vm1, %v1226_v61  ;;  %v1227_v5 = vmul.f32 %v1219_v63, %v1211_v1  ;;  %v784_v6 = vmul.f32 %v752_v20, %v720_v2 }
  0x3e   : > { %1776 = vmatprep.mubr.msk.f32.mxu0 %vm802_vm1, %v783_v3  ;;  %v1228_v34 = vmul.f32 %v1220_v11, %v1212_v4  ;;  %v1679_v11 = vld [vmem:[%s2398_s9] ss:$0 sm:$0xff] }
  0x3f   : > { %1816 = vmatprep.mubr.msk.f32.mxu1 %vm802_vm1, %v1227_v5 }
  0x40   : > { %1777 = vmatmul.mubr.msk.f32.gmra.mrb[18].mxu0 %vm802_vm1, %v784_v6 }
  0x41   : > { %1817 = vmatmul.mubr.msk.f32.gmra.mrb[18].mxu1 %vm802_vm1, %v1228_v34 }
  0xef   : > { %v2319_v8 = vpop.f32.mrb[0].mxu0 }
  0xf0   : > { %v1781_v9 = vpop.f32.mrb[0].mxu1  ;;  %v2321_v10 = vpop.f32.mrb[1].mxu0 }
  0xf1   : > { %v1069_v12 = vpop.f32.mrb[1].mxu1 }
  0xf3   : > { %v2323_v13 = vpop.f32.mrb[2].mxu0 }
  0xf4   : > { %v1784_v14 = vpop.f32.mrb[2].mxu1  ;;  %v2325_v15 = vpop.f32.mrb[3].mxu0 }
  0xf5   : > { %v1079_v16 = vpop.f32.mrb[3].mxu1 }
  0xf7   : > { %v1757_v18 = vpop.f32.mrb[4].mxu0 }
  0xf8   : > { %v1787_v17 = vpop.f32.mrb[4].mxu1  ;;  %v989_v19 = vpop.f32.mrb[5].mxu0 }
  0xf9   : > { %v1089_v21 = vpop.f32.mrb[5].mxu1 }
  0xfb   : > { %v1760_v22 = vpop.f32.mrb[6].mxu0 }
  0xfc   : > { %v2327_v23 = vpop.f32.mrb[6].mxu1  ;;  %v999_v24 = vpop.f32.mrb[7].mxu0 }
  0xfd   : > { %v2329_v25 = vpop.f32.mrb[7].mxu1 }
  0xff   : > { %v1763_v26 = vpop.f32.mrb[8].mxu0 }
 0x100   : > { %v1793_v27 = vpop.f32.mrb[8].mxu1  ;;  %v1129_v28 = vmax.f32 %v2319_v8, %v1763_v26  ;;  %v1009_v30 = vpop.f32.mrb[9].mxu0 }
 0x101   : > { %v1141_v29 = vmax.f32 %v1781_v9, %v1793_v27  ;;  %v1109_v31 = vpop.f32.mrb[9].mxu1  ;;  %v1128_v32 = vmax.f32 %v2321_v10, %v1009_v30 }
 0x102   : > { %v1140_v33 = vmax.f32 %v1069_v12, %v1109_v31 }
 0x103   : > { %v1766_v35 = vpop.f32.mrb[10].mxu0 }
 0x104   : > { %v1796_v36 = vpop.f32.mrb[10].mxu1  ;;  %v1131_v37 = vmax.f32 %v2323_v13, %v1766_v35  ;;  %v1019_v39 = vpop.f32.mrb[11].mxu0 }
 0x105   : > { %v1143_v38 = vmax.f32 %v1784_v14, %v1796_v36  ;;  %v1119_v40 = vpop.f32.mrb[11].mxu1  ;;  %v1130_v41 = vmax.f32 %v2325_v15, %v1019_v39 }
 0x106   : > { %v1142_v42 = vmax.f32 %v1079_v16, %v1119_v40  ;;  %v1681_v40 = vld [vmem:[%s2404_s15] ss:$0 sm:$0xff] }
 0x107   : > { %v1769_v43 = vpop.f32.mrb[12].mxu0 }
 0x108   : > { %v1809_v44 = vpop.f32.mrb[12].mxu1  ;;  %v1133_v45 = vmax.f32 %v1757_v18, %v1769_v43  ;;  %v1029_v46 = vpop.f32.mrb[13].mxu0  ;;  %v1680_v18 = vld [vmem:[%s2399_s10] ss:$0 sm:$0xff] }
 0x109   : > { %v1334_v47 = vpop.f32.mrb[13].mxu1  ;;  %v1132_v48 = vmax.f32 %v989_v19, %v1029_v46  ;;  %v1340_v2 = vadd.f32 %v1809_v44, %v1669_v58 }
 0x10a   : > { %v1149_v49 = vmax.f32 %v1133_v45, %v1141_v29  ;;  %v1335_v6 = vadd.f32 %v1669_v58, %v1334_v47 }
 0x10b   : > { %v1148_v50 = vmax.f32 %v1132_v48, %v1140_v33  ;;  %v1772_v51 = vpop.f32.mrb[14].mxu0 }
 0x10c   : > { %v1812_v52 = vpop.f32.mrb[14].mxu1  ;;  %v1135_v53 = vmax.f32 %v1760_v22, %v1772_v51  ;;  %v1039_v54 = vpop.f32.mrb[15].mxu0  ;;  %v1164_v63 = vadd.f32 %v1666_v57, %v1149_v49 }
 0x10d   : > { %v1344_v55 = vpop.f32.mrb[15].mxu1  ;;  %v1134_v56 = vmax.f32 %v999_v24, %v1039_v54  ;;  %v1163_v4 = vadd.f32 %v1666_v57, %v1148_v50  ;;  %v1350_v34 = vadd.f32 %v1812_v52, %v1669_v58 }
 0x10e   : > { %v1151_v59 = vmax.f32 %v1135_v53, %v1143_v38 }
 0x10f   : > { %v1150_v7 = vmax.f32 %v1134_v56, %v1142_v42  ;;  %v1775_v60 = vpop.f32.mrb[16].mxu0  ;;  %v1345_v42 = vadd.f32 %v1669_v58, %v1344_v55 }
 0x110   : > { %v1815_v61 = vpop.f32.mrb[16].mxu1  ;;  %v1137_v62 = vmax.f32 %v1775_v60, %v1787_v17  ;;  %v1049_v0 = vpop.f32.mrb[17].mxu0  ;;  %v1166_v14 = vadd.f32 %v1666_v57, %v1151_v59 }
 0x111   : > { %v1360_v20 = vadd.f32 %v1815_v61, %v1669_v58  ;;  %v1354_v1 = vpop.f32.mrb[17].mxu1  ;;  %v1136_v3 = vmax.f32 %v1049_v0, %v1089_v21  ;;  %v1165_v16 = vadd.f32 %v1666_v57, %v1150_v7 }
 0x112   : > { %v1355_v5 = vadd.f32 %v1669_v58, %v1354_v1  ;;  %v1145_v8 = vmax.f32 %v1129_v28, %v1137_v62 }
 0x113   : > { %v1378_v9 = vadd.f32 %v1360_v20, %v1164_v63  ;;  %v1144_v10 = vmax.f32 %v1128_v32, %v1136_v3  ;;  %v1778_v13 = vpop.f32.mrb[18].mxu0 }
 0x114   : > { %v1377_v12 = vadd.f32 %v1355_v5, %v1163_v4  ;;  %v1818_v15 = vpop.f32.mrb[18].mxu1  ;;  %v1160_v17 = vadd.f32 %v1666_v57, %v1145_v8  ;;  %v1139_v21 = vmax.f32 %v1778_v13, %v2327_v23  ;;  %v1059_v24 = vpop.f32.mrb[19].mxu0 }
 0x115   : > { %v1393_v19 = vmul.f32 %v1679_v11, %v1378_v9  ;;  %v1370_v22 = vadd.f32 %v1818_v15, %v1669_v58  ;;  %v1364_v26 = vpop.f32.mrb[19].mxu1  ;;  %v1159_v27 = vadd.f32 %v1666_v57, %v1144_v10  ;;  %v1138_v29 = vmax.f32 %v1059_v24, %v2329_v25 }
 0x116   : > { %v1392_v28 = vmul.f32 %v1679_v11, %v1377_v12  ;;  %v1365_v30 = vadd.f32 %v1669_v58, %v1364_v26  ;;  %v1374_v31 = vadd.f32 %v1340_v2, %v1160_v17  ;;  %v1147_v32 = vmax.f32 %v1131_v37, %v1139_v21 }
 0x117   : > { %v1380_v33 = vadd.f32 %v1370_v22, %v1166_v14  ;;  %v1408_v35 = vadd.f32 %v1680_v18, %v1393_v19  ;;  %v1373_v36 = vadd.f32 %v1335_v6, %v1159_v27  ;;  %v1146_v38 = vmax.f32 %v1130_v41, %v1138_v29 }
 0x118   : > { %v1379_v39 = vadd.f32 %v1365_v30, %v1165_v16  ;;  %v1407_v23 = vadd.f32 %v1680_v18, %v1392_v28  ;;  %v1162_v43 = vadd.f32 %v1666_v57, %v1147_v32  ;;  %v1389_v45 = vmul.f32 %v1679_v11, %v1374_v31  ;;  %v1682_v16 = vld [vmem:[#allocation2] ss:$0 sm:$0xff] }
 0x119   : > { %v1416_v44 = vmax.f32 %v1408_v35, 0.0  ;;  %v1161_v46 = vadd.f32 %v1666_v57, %v1146_v38  ;;  %v1388_v48 = vmul.f32 %v1679_v11, %v1373_v36  ;;  %v1395_v53 = vmul.f32 %v1679_v11, %v1380_v33  ;;  %v1475_v36 = vld [vmem:[%s585_s24 + $0x8] sm:$0xff] }
 0x11a   : > { %v1394_v47 = vmul.f32 %v1679_v11, %v1379_v39  ;;  %v1415_v25 = vmax.f32 %v1407_v23, 0.0  ;;  %v1376_v49 = vadd.f32 %v1350_v34, %v1162_v43  ;;  %v1404_v50 = vadd.f32 %v1680_v18, %v1389_v45  ;;  %v1478_v23 = vld [vmem:[%s585_s24 + $0x20] sm:$0xff] }
 0x11b   : > { %v1431_v37 = vmul.f32 %v1681_v40, %v1416_v44  ;;  %v1375_v51 = vadd.f32 %v1345_v42, %v1161_v46  ;;  %v1403_v41 = vadd.f32 %v1680_v18, %v1388_v48  ;;  %v1410_v0 = vadd.f32 %v1680_v18, %v1395_v53  ;;  %v1479_v46 = vld [vmem:[%s585_s24 + $0x28] sm:$0xff]  ;;  %v1480_v48 = vld [vmem:[%s585_s24 + $0x30] sm:$0xff] }
 0x11c   : > { %v1430_v52 = vmul.f32 %v1681_v40, %v1415_v25  ;;  %v1412_v56 = vmax.f32 %v1404_v50, 0.0  ;;  %v1391_v59 = vmul.f32 %v1679_v11, %v1376_v49  ;;  %v1409_v57 = vadd.f32 %v1680_v18, %v1394_v47  ;;  %v1477_v50 = vld [vmem:[%s585_s24 + $0x18] sm:$0xff] }
 0x11d   : > { %v1450_v54 = vsel %vm1434_vm2, %v1431_v37, 0.0  ;;  %v1411_v58 = vmax.f32 %v1403_v41, 0.0  ;;  %v1390_v7 = vmul.f32 %v1679_v11, %v1375_v51  ;;  %v1418_v34 = vmax.f32 %v1410_v0, 0.0  ;;  %v1476_v41 = vld [vmem:[%s585_s24 + $0x10] sm:$0xff] }
 0x11e   : > { %1451 = vadd.xlane.f32.xlu1 %v1450_v54  ;;  %v1447_v55 = vsel %vm1434_vm2, %v1430_v52, 0.0  ;;  %v1427_v60 = vmul.f32 %v1681_v40, %v1412_v56  ;;  %v1406_v61 = vadd.f32 %v1680_v18, %v1391_v59  ;;  %v1417_v3 = vmax.f32 %v1409_v57, 0.0  ;;  %v1481_v56 = vld [vmem:[%s585_s24 + $0x38] sm:$0xff] }
 0x11f   : > { %1448 = vadd.xlane.f32.xlu0 %v1447_v55  ;;  %v1405_v62 = vadd.f32 %v1680_v18, %v1390_v7  ;;  %v1426_v1 = vmul.f32 %v1681_v40, %v1411_v58  ;;  %v1433_v10 = vmul.f32 %v1681_v40, %v1418_v34  ;;  %v1860_v14 = vmov 0  }
 0x120   : > { %v1438_v63 = vsel %vm1434_vm2, %v1427_v60, 0.0  ;;  %v1414_v20 = vmax.f32 %v1406_v61, 0.0  ;;  %v1432_v8 = vmul.f32 %v1681_v40, %v1417_v3  ;;  %1851 = vset.pattern.permute.xlu1 %v1860_v14  ;;  %1850 = vset.pattern.permute.xlu0 %v1860_v14 }
 0x121   : > { %v1413_v2 = vmax.f32 %v1405_v62, 0.0  ;;  %v1435_v11 = vsel %vm1434_vm2, %v1426_v1, 0.0  ;;  %v1456_v13 = vsel %vm1434_vm2, %v1433_v10, 0.0 }
 0x122   : > { %v1429_v4 = vmul.f32 %v1681_v40, %v1414_v20  ;;  %v1453_v12 = vsel %vm1434_vm2, %v1432_v8, 0.0 }
 0x123   : > { %1439 = vadd.xlane.f32.xlu0 %v1438_v63  ;;  %v1428_v6 = vmul.f32 %v1681_v40, %v1413_v2  ;;  %v1474_v40 = vld [vmem:[%s585_s24] sm:$0xff] }
 0x124   : > { %v1444_v5 = vsel %vm1434_vm2, %v1429_v4, 0.0 }
 0x125   : > { %1445 = vadd.xlane.f32.xlu1 %v1444_v5  ;;  %v1441_v9 = vsel %vm1434_vm2, %v1428_v6, 0.0 }
 0x127   : > { %1436 = vadd.xlane.f32.xlu0 %v1435_v11 }
 0x129   : > { %1442 = vadd.xlane.f32.xlu1 %v1441_v9 }
 0x12b   : > { %1454 = vadd.xlane.f32.xlu0 %v1453_v12 }
 0x12d   : > { %1457 = vadd.xlane.f32.xlu1 %v1456_v13 }
 0x1ab   : > { %v1452_v24 = vpop.xlane.xlu1 %1451 }
 0x1ac   : > { %v1449_v15 = vpop.xlane.xlu0 %1448  ;;  %v1471_v26 = vadd.f32 %v1682_v16, %v1452_v24 }
 0x1ad   : > { %v1470_v21 = vadd.f32 %v1682_v16, %v1449_v15 }
 0x1b0   : > { %v1440_v18 = vpop.xlane.xlu0 %1439 }
 0x1b1   : > { %v1467_v17 = vadd.f32 %v1682_v16, %v1440_v18 }
 0x1b2   : > { %v1446_v27 = vpop.xlane.xlu1 %1445 }
 0x1b3   : > { %1489 = vperm.xlu1 %1851, %v1467_v17   ;;  %v1469_v31 = vadd.f32 %v1682_v16, %v1446_v27 }
 0x1b4   : > { %v1437_v19 = vpop.xlane.xlu0 %1436 }
 0x1b5   : > { %v1466_v22 = vadd.f32 %v1682_v16, %v1437_v19 }
 0x1b6   : > { %v1443_v30 = vpop.xlane.xlu1 %1442 }
 0x1b7   : > { %1484 = vperm.xlu0 %1850, %v1466_v22   ;;  %1504 = vperm.xlu1 %1851, %v1470_v21   ;;  %v1468_v32 = vadd.f32 %v1682_v16, %v1443_v30 }
 0x1b8   : > { %v1455_v28 = vpop.xlane.xlu0 %1454 }
 0x1b9   : > { %v1472_v29 = vadd.f32 %v1682_v16, %v1455_v28 }
 0x1ba   : > { %v1458_v33 = vpop.xlane.xlu1 %1457 }
 0x1bb   : > { %1509 = vperm.xlu1 %1851, %v1471_v26   ;;  %v1473_v35 = vadd.f32 %v1682_v16, %v1458_v33 }
 0x1bf   : > { %1514 = vperm.xlu1 %1851, %v1472_v29  }
 0x1c3   : > { %1499 = vperm.xlu1 %1851, %v1469_v31  }
 0x1c7   : > { %1494 = vperm.xlu1 %1851, %v1468_v32  }
 0x1cb   : > { %1519 = vperm.xlu1 %1851, %v1473_v35  }
 0x232   : > { %v1490_v38 = vpop.permute.xlu1 %1489 }
 0x233   : > { %v1523_v39 = vmul.f32 %v1490_v38, %v1475_v36 }
 0x235   : > { %1532 = vst.msk [vmem:[%s2368_s29 + $0x8] sm:$0xff] %vm1530_vm3, %v1523_v39 }
 0x236   : > { %v1485_v42 = vpop.permute.xlu0 %1484  ;;  %v1505_v43 = vpop.permute.xlu1 %1504 }
 0x237   : > { %v1522_v44 = vmul.f32 %v1485_v42, %v1474_v40  ;;  %v1526_v45 = vmul.f32 %v1505_v43, %v1478_v23 }
 0x239   : > { %1531 = vst.msk [vmem:[%s2368_s29] sm:$0xff] %vm1530_vm3, %v1522_v44  ;;  %1535 = vst.msk [vmem:[%s2368_s29 + $0x20] sm:$0xff] %vm1530_vm3, %v1526_v45 }
 0x23a   : > { %v1510_v47 = vpop.permute.xlu1 %1509 }
 0x23b   : > { %v1527_v25 = vmul.f32 %v1510_v47, %v1479_v46 }
 0x23d   : > { %1536 = vst.msk [vmem:[%s2368_s29 + $0x28] sm:$0xff] %vm1530_vm3, %v1527_v25 }
 0x23e   : > { %v1515_v49 = vpop.permute.xlu1 %1514 }
 0x23f   : > { %v1528_v37 = vmul.f32 %v1515_v49, %v1480_v48 }
 0x241   : > { %1537 = vst.msk [vmem:[%s2368_s29 + $0x30] sm:$0xff] %vm1530_vm3, %v1528_v37 }
 0x242   : > { %v1500_v51 = vpop.permute.xlu1 %1499 }
 0x243   : > { %v1525_v52 = vmul.f32 %v1500_v51, %v1477_v50 }
 0x245   : > { %1534 = vst.msk [vmem:[%s2368_s29 + $0x18] sm:$0xff] %vm1530_vm3, %v1525_v52 }
 0x246   : > { %v1495_v53 = vpop.permute.xlu1 %1494 }
 0x247   : > { %v1524_v54 = vmul.f32 %v1495_v53, %v1476_v41 }
 0x249   : > { %1533 = vst.msk [vmem:[%s2368_s29 + $0x10] sm:$0xff] %vm1530_vm3, %v1524_v54 }
 0x24a   : > { %v1520_v59 = vpop.permute.xlu1 %1519 }
 0x24b   : > { %v1529_v55 = vmul.f32 %v1520_v59, %v1481_v56 }
 0x24d   : > { %1538 = vst.msk [vmem:[%s2368_s29 + $0x38] sm:$0xff] %vm1530_vm3, %v1529_v55 }
 0x24e PF: > { %s29_s26 = sadd.s32 1, %s1858_s26  }
 0x24f   : > { %p26_p4 = scmp.ge.s32.totalorder %s29_s26, 4  }
 0x251   :  { %28 = sbr.rel (!%p26_p4) target bundleno = 3 (0x3), region = 124 }

</bundles_post_ra>
